<compile_context>
chip_gen: v7x
topology: tpu7x:2x2x1
jax: 0.10.0
libtpu: 0.0.40
codegen_flags: <defaults>
</compile_context>

<pallas_src>
import jax
import jax.numpy as jnp
from jax import lax
from jax.experimental import pallas as pl
from jax.experimental.pallas import tpu as pltpu


C = 7            # real classes
C_PAD = 8        # classes padded to one sublane group
K = 16           # input features
LANE = 128       # lane tile (batch axis in the transposed layout)
NEG_BIG = -1e30  # f32-safe "-inf" for the padded class row


def softmax_reg_kernel(xt_ref, wt_ref, b_ref, o_ref):
    # logits (C_PAD, TM) = W^T @ x^T + b ; classes on sublanes, batch on lanes.
    logits = jnp.dot(wt_ref[...], xt_ref[...],
                     preferred_element_type=jnp.float32) + b_ref[...]
    # Numerically stable softmax over the class (sublane) axis.  The padded
    # class row carries bias NEG_BIG, so it never wins the max and exp -> 0.
    m = jnp.max(logits, axis=0, keepdims=True)      # (1, TM)  XLU sublane reduce
    e = jnp.exp(logits - m)                         # EUP, only C_PAD sublanes
    denom = jnp.sum(e, axis=0, keepdims=True)       # (1, TM)
    # Exact divide so each softmax column sums to 1 to f32 rounding.
    o_ref[...] = (e / denom).astype(o_ref.dtype)


def _round_up(n, m):
    return ((n + m - 1) // m) * m


def prepare_params(w, b):
    """Pad/transpose the weights ONCE at model init (not per forward call).

    w: (K, C), b: (1, C) or (C,)  ->  wt_pad: (C_PAD, K), b_pad: (C_PAD, 1)
    """
    w = jnp.asarray(w, jnp.float32)
    b = jnp.asarray(b, jnp.float32).reshape(-1)
    wt_pad = jnp.zeros((C_PAD, K), jnp.float32).at[:C, :].set(w.T)
    b_pad = jnp.full((C_PAD, 1), NEG_BIG, jnp.float32).at[:C, 0].set(b)
    return wt_pad, b_pad


def softmax_model_forward(x, wt_pad, b_pad, *, tm=4096):
    """x: (N, 16) f32 -> (N, 7) f32 softmax probabilities."""
    N = x.shape[0]
    # Batch sits on the lane axis in the transposed layout: pad only to 128.
    n_pad = _round_up(N, LANE)
    x_t = jnp.zeros((K, n_pad), jnp.float32).at[:, :N].set(
        jnp.asarray(x, jnp.float32).T)

    # Batch-column tile per grid step.
    TM = min(tm, n_pad)
    if n_pad >= 2 * LANE and n_pad <= TM:
        # v7x megacore: keep >=2 grid steps when the batch is big enough.
        TM = _round_up(pl.cdiv(n_pad, 2), LANE)
    grid = (pl.cdiv(n_pad, TM),)

    out_t = pl.pallas_call(
        softmax_reg_kernel,
        out_shape=jax.ShapeDtypeStruct((C_PAD, n_pad), jnp.float32),
        grid=grid,
        in_specs=[
            pl.BlockSpec((K, TM), lambda i: (0, i)),       # x^T column tile
            pl.BlockSpec((C_PAD, K), lambda i: (0, 0)),    # W^T (resident)
            pl.BlockSpec((C_PAD, 1), lambda i: (0, 0)),    # bias (resident)
        ],
        out_specs=pl.BlockSpec((C_PAD, TM), lambda i: (0, i)),
        compiler_params=pltpu.CompilerParams(
            dimension_semantics=("parallel",)),
        cost_estimate=pl.CostEstimate(
            flops=2 * n_pad * K * C_PAD,
            transcendentals=n_pad * C_PAD,
            bytes_accessed=4 * (K * n_pad + C_PAD * K + C_PAD + C_PAD * n_pad),
        ),
    )(x_t, wt_pad, b_pad)

    # Back to the module's (N, 7) layout.
    # TODO(synk): fused consumers inside the same jit could take out_t[:C]
    # directly and skip this slice/transpose pass.
    return out_t[:C, :N].T


def reference_forward(x, w, b):
    logits = jnp.dot(x, w, precision=lax.Precision.HIGHEST) + b
    return jax.nn.softmax(logits, axis=-1)


if __name__ == "__main__":
    key = jax.random.PRNGKey(0)
    kx, kw, kb = jax.random.split(key, 3)

    # Shapes consistent with the PyTorch module: Linear(16, 7); the zoo
    # training split used there has 91 rows x 16 features.
    in_features, out_features = 16, 7
    batch = 91
    bound = 1.0 / float(in_features) ** 0.5
    w = jax.random.uniform(kw, (in_features, out_features),
                           minval=-bound, maxval=bound, dtype=jnp.float32)
    b = jax.random.uniform(kb, (1, out_features),
                           minval=-bound, maxval=bound, dtype=jnp.float32)
    x = jax.random.normal(kx, (batch, in_features), dtype=jnp.float32)

    wt_pad, b_pad = prepare_params(w, b)      # once, at "model init"
    out = softmax_model_forward(x, wt_pad, b_pad)
    out = jax.block_until_ready(out)

    ref = reference_forward(x, w, b)
    assert out.shape == (batch, out_features)
    assert jnp.allclose(out, ref, atol=1e-4, rtol=1e-4)
    # Exact divide -> softmax rows sum to 1 to f32 rounding.
    assert jnp.allclose(jnp.sum(out, axis=-1), jnp.ones((batch,)), atol=1e-4)

    print("KERNEL_OK")
</pallas_src>

<mosaic_0001>
module attributes {stable_mosaic.version = 11 : i64} {
  func.func @softmax_reg_kernel(%arg0: i32, %arg1: memref<16x128xf32, #tpu.memory_space<vmem>>, %arg2: memref<8x16xf32, #tpu.memory_space<vmem>>, %arg3: memref<8x1xf32, #tpu.memory_space<vmem>>, %arg4: memref<8x128xf32, #tpu.memory_space<vmem>>) attributes {dimension_semantics = [#tpu.dimension_semantics<parallel>], iteration_bounds = array<i64: 1>, scalar_prefetch = 0 : i64, scratch_operands = 0 : i64, tpu.core_type = #tpu.core_type<tc>, window_params = [{transform_indices = @transform_0, window_bounds = array<i64: 16, 128>}, {pipeline_mode = #tpu.pipeline_mode<synchronous>, transform_indices = @transform_1, window_bounds = array<i64: 8, 16>}, {pipeline_mode = #tpu.pipeline_mode<synchronous>, transform_indices = @transform_2, window_bounds = array<i64: 8, 1>}, {transform_indices = @transform_3, window_bounds = array<i64: 8, 128>}]} {
    %c0 = arith.constant 0 : index
    %c0_0 = arith.constant 0 : index
    %0 = vector.load %arg2[%c0, %c0_0] : memref<8x16xf32, #tpu.memory_space<vmem>>, vector<8x16xf32>
    %c0_1 = arith.constant 0 : index
    %c0_2 = arith.constant 0 : index
    %1 = vector.load %arg1[%c0_1, %c0_2] : memref<16x128xf32, #tpu.memory_space<vmem>>, vector<16x128xf32>
    %cst = arith.constant dense<0.000000e+00> : vector<8x128xf32>
    %2 = tpu.matmul %0, %1, %cst {dimension_numbers = #tpu.dot_dimension_numbers<[1], [0], [0], [1], [0, 0, 1, 1], [], []>} : vector<8x16xf32>, vector<16x128xf32>, vector<8x128xf32> -> vector<8x128xf32>
    %c0_3 = arith.constant 0 : index
    %c0_4 = arith.constant 0 : index
    %3 = vector.load %arg3[%c0_3, %c0_4] : memref<8x1xf32, #tpu.memory_space<vmem>>, vector<8x1xf32>
    %4 = vector.broadcast %3 : vector<8x1xf32> to vector<8x128xf32>
    %5 = arith.addf %2, %4 : vector<8x128xf32>
    %cst_5 = arith.constant dense<0xFF800000> : vector<128xf32>
    %6 = vector.multi_reduction <maximumf>, %5, %cst_5 [0] : vector<8x128xf32> to vector<128xf32>
    %7 = vector.shape_cast %6 : vector<128xf32> to vector<1x128xf32>
    %8 = vector.broadcast %7 : vector<1x128xf32> to vector<8x128xf32>
    %9 = arith.subf %5, %8 : vector<8x128xf32>
    %10 = math.exp %9 : vector<8x128xf32>
    %cst_6 = arith.constant dense<0.000000e+00> : vector<128xf32>
    %11 = vector.multi_reduction <add>, %10, %cst_6 [0] : vector<8x128xf32> to vector<128xf32>
    %12 = vector.shape_cast %11 : vector<128xf32> to vector<1x128xf32>
    %13 = vector.broadcast %12 : vector<1x128xf32> to vector<8x128xf32>
    %14 = arith.divf %10, %13 : vector<8x128xf32>
    %c0_7 = arith.constant 0 : index
    %c0_8 = arith.constant 0 : index
    %15 = vector.load %arg4[%c0_7, %c0_8] : memref<8x128xf32, #tpu.memory_space<vmem>>, vector<8x128xf32>
    tpu.vector_store %arg4[%c0_7, %c0_8], %14 {strides = array<i32>} : memref<8x128xf32, #tpu.memory_space<vmem>>, vector<8x128xf32>,
    return
  }
  func.func @transform_0(%arg0: i32) -> (i32, i32) {
    %c0_i32 = arith.constant 0 : i32
    %c0_i32_0 = arith.constant 0 : i32
    return %c0_i32, %arg0 : i32, i32
  }
  func.func @transform_1(%arg0: i32) -> (i32, i32) {
    %c0_i32 = arith.constant 0 : i32
    %c0_i32_0 = arith.constant 0 : i32
    %c0_i32_1 = arith.constant 0 : i32
    return %c0_i32, %c0_i32_0 : i32, i32
  }
  func.func @transform_2(%arg0: i32) -> (i32, i32) {
    %c0_i32 = arith.constant 0 : i32
    %c0_i32_0 = arith.constant 0 : i32
    %c0_i32_1 = arith.constant 0 : i32
    return %c0_i32, %c0_i32_0 : i32, i32
  }
  func.func @transform_3(%arg0: i32) -> (i32, i32) {
    %c0_i32 = arith.constant 0 : i32
    %c0_i32_0 = arith.constant 0 : i32
    return %c0_i32, %arg0 : i32, i32
  }
}

</mosaic_0001>

<bundles_post_ra>
// kernel: tpu_custom_call.1
= control target key start
LH: loop header
LB: loop body
LE: loop exit
PB: predicated region body
PF: predicated region fallthrough
CT: control target
= control target key end

     0   :  { %8 = vsyncpa [#allocation3], 0  ;;  %s278_s0 = inlined_call_operand.hbm [shape: f32[16,128], index: 0, kind: input, shape index: {}]   ;;  %s279_s1 = inlined_call_operand.vmem [shape: f32[8,16], index: 1, kind: input, shape index: {}]   ;;  %s280_s2 = inlined_call_operand.vmem [shape: f32[8,1], index: 2, kind: input, shape index: {}]   ;;  %s281_s3 = inlined_call_operand.hbm [shape: f32[8,128], index: 3, kind: output, shape index: {}]  }
   0x1   :  { %9 = vsyncpa [#allocation4], 0  ;;  %s220_s12 = smov [#allocation2]   ;;  %s172_s16 = scalar_lea.hbm %s278_s0, 256 }
   0x2   :  { %s15_s13 = sshll.u32 %s220_s12, 4  ;;  %p173_p0 = scmp.ne.s32.totalorder %s278_s0, %s172_s16  ;;  %s16_s13 = int_to_ptr.vmem [resolvable:$true] %s15_s13 }
   0x3   :  { %p176_p1 = scmp.lt.u32.totalorder %s172_s16, %s278_s0 }
   0x5   :  { %p178_p2 = pnand %p176_p1, %p173_p0 }
   0x7   :  { %181 = shalt.err (!%p178_p2)
}
   0x8   :  { %s182_s21 = scalar_lea.vmem %s16_s13, 256  ;;  %p187_p4 = scmp.lt.s32.totalorder %s16_s13, %s16_s13 }
   0x9   :  { %p183_p3 = scmp.ne.s32.totalorder %s16_s13, %s182_s21  ;;  %p188_p5 = scmp.lt.s32.totalorder %s182_s21, %s182_s21 }
   0xb   :  { %p189_p6 = por %p188_p5, %p187_p4 }
   0xd   :  { %p190_p7 = pnand %p189_p6, %p183_p3 }
   0xf   :  { %193 = shalt.err (!%p190_p7)
}
  0x10   :  { %s221_s22 = smov 128   ;;  %s222_s23 = smov 8  }
  0x11   :  { %21 = dma.hbm_to_vmem [thread:$0]  %s278_s0, 256, %s16_s13, [#allocation3], %s221_s22, %s221_s22, %s222_s23  }
  0x12   :  { %216 = dma.done.wait [#allocation3], 256  }
  0x13   :  { %217 = vsyncadd [#allocation3], 4294967040  ;;  %v223_v0 = vmov 0.0|0.0   ;;  %vm224_vm0 = vmmov 0   ;;  %v225_v1 = vmov 0.0   ;;  %v226_v2 = vmov 0  }
  0x14   :  { %156 = vmatprep.subr.bf16.mxu0 %v223_v0  ;;  %153 = vmatprep.mubr.msk.f32.mxu0 %vm224_vm0, %v225_v1  ;;  %v30_v3 = vld [vmem:[#allocation2] sm:$0xff]  ;;  %v31_v4 = vld [vmem:[#allocation2 + $0x8] sm:$0xff]  ;;  %vm38_vm1 = vcmask 130048  }
  0x15   :  { %167 = vset.pattern.permute.xlu0 %v226_v2  ;;  %v157_v5 = vpack.c.bf16 %v31_v4, %v30_v3  ;;  %v32_v6 = vld [vmem:[%s280_s2] sm:$0xff] }
  0x16   :  { %35 = vperm.xlu0 %167, %v32_v6   ;;  %v29_v7 = vld [vmem:[%s279_s1] sm:$0xff]  ;;  %s227_s1 = smov [#allocation5]  }
  0x17   :  { %158 = vmatpush3.bf16.msra.mxu0 %v157_v5  ;;  %s136_s2 = sshll.u32 %s227_s1, 4  ;;  %s137_s2 = int_to_ptr.vmem [resolvable:$true] %s136_s2 }
  0x18   :  { %s194_s29 = scalar_lea.vmem %s137_s2, 128  ;;  %p199_p9 = scmp.lt.s32.totalorder %s137_s2, %s137_s2 }
  0x19   :  { %p195_p8 = scmp.ne.s32.totalorder %s137_s2, %s194_s29  ;;  %p200_p10 = scmp.lt.s32.totalorder %s194_s29, %s194_s29 }
  0x1a   :  { %154 = vmatmul.mubr.msk.f32.vlgmr.msra.gmra.mrb[0].mxu0 %vm38_vm1, %v29_v7 }
  0x1b   :  { %p201_p11 = por %p200_p10, %p199_p9 }
  0x1d   :  { %p202_p12 = pnand %p201_p11, %p195_p8 }
  0x95   :  { %v36_v8 = vpop.permute.xlu0 %35 }
  0xed   :  { %v108_v9 = vpop.f32.mrb[0].mxu0 }
  0xee   :  { %v109_v10 = vadd.f32 %v108_v9, %v36_v8  ;;  %v155_v11 = vpop.f32.mrb[1].mxu0 }
  0xf0   :  { %v112_v12 = vrot.slane %v109_v10, 4 }
  0xf2   :  { %v113_v13 = vmax.f32 %v109_v10, %v112_v12 }
  0xf4   :  { %v114_v14 = vrot.slane %v113_v13, 2 }
  0xf6   :  { %v115_v15 = vmax.f32 %v113_v13, %v114_v14 }
  0xf8   :  { %v116_v16 = vrot.slane %v115_v15, 1 }
  0xfa   :  { %v117_v17 = vmax.f32 %v115_v15, %v116_v16 }
  0xfc   :  { %v118_v18 = vsub.f32 %v109_v10, %v117_v17 }
  0xfe   :  { %v119_v19 = vmul.f32 1.442695, %v118_v18 }
 0x100   :  { %168 = vpow2.f32 %v119_v19 }
 0x10a   :  { %v169_v20 = vpop.eup %168 }
 0x10b   :  { %v121_v21 = vrot.slane %v169_v20, 4 }
 0x10d   :  { %v122_v22 = vadd.f32 %v169_v20, %v121_v21 }
 0x10f   :  { %v123_v23 = vrot.slane %v122_v22, 2 }
 0x111   :  { %v124_v24 = vadd.f32 %v123_v23, %v122_v22 }
 0x113   :  { %v125_v25 = vrot.slane %v124_v24, 1 }
 0x115   :  { %v126_v26 = vadd.f32 %v125_v25, %v124_v24 }
 0x117   :  { %170 = vrcp.f32 %v126_v26 }
 0x121   :  { %v171_v27 = vpop.eup %170 }
 0x122   :  { %v128_v28 = vmul.f32 %v171_v27, %v169_v20 }
 0x124   :  { %129 = vst [vmem:[#allocation5] sm:$0xff] %v128_v28 }
 0x125   :  { %205 = shalt.err (!%p202_p12)
}
 0x126   :  { %s206_s5 = scalar_lea.hbm %s281_s3, 128 }
 0x127   :  { %p207_p13 = scmp.ne.s32.totalorder %s281_s3, %s206_s5  ;;  %p210_p0 = scmp.lt.u32.totalorder %s206_s5, %s281_s3 }
 0x129   :  { %p212_p1 = pnand %p210_p0, %p207_p13 }
 0x12b   :  { %215 = shalt.err (!%p212_p1)
}
 0x12c   :  { %139 = dma.vmem_to_hbm [thread:$0]  %s137_s2, 128, %s281_s3, [#allocation4]  }
 0x12d   :  { %218 = dma.done.wait [#allocation4], 128  }
 0x12e   :  { %219 = vsyncadd [#allocation4], 4294967168 }
 0x12f   :  { %143 = vsyncpa [#allocation3], 1 }
 0x130   :  { %144 = vsyncpa [#allocation4], 1 }

</bundles_post_ra>
